<compile_context>
chip_gen: v7x
topology: tpu7x:2x2x1
jax: 0.10.0
libtpu: 0.0.40
codegen_flags: <defaults>
</compile_context>

<pallas_src>
import functools

import jax
import jax.numpy as jnp
from jax.experimental import pallas as pl
from jax.experimental.pallas import tpu as pltpu


def _round_up(x, m):
    return ((x + m - 1) // m) * m


def _round_down(x, m):
    return (x // m) * m


def _pixelnorm_kernel(x_ref, o_ref, *, inv_c):
    # x_ref: (C, thw) or (Nb, C, HW) block; channels are axis -2 in both cases.
    x = x_ref[...]
    xf = x.astype(jnp.float32)
    # f32 square-sum over the channel axis (VPU).
    ss = jnp.sum(xf * xf, axis=-2, keepdims=True)
    # mean + eps folded into a single rsqrt per lane (EUP), broadcast mul (VPU).
    inv = jax.lax.rsqrt(ss * inv_c + 1e-8)
    o_ref[...] = (x * inv).astype(o_ref.dtype)


def pixel_norm(x, *, target_block_bytes=2 * 1024 * 1024):
    """x: (N, C, H, W) array (NCHW, matching the PyTorch module)."""
    N, C, H, W = x.shape
    HW = H * W
    x2d = x.reshape(N, C, HW)
    itemsize = jnp.dtype(x.dtype).itemsize
    img_bytes = C * HW * itemsize

    # inv_c as a Python float -> compile-time literal, no captured constant.
    kernel = functools.partial(_pixelnorm_kernel, inv_c=1.0 / float(C))

    if img_bytes <= target_block_bytes:
        # One fully contiguous (C, HW) block per image; fold several batch
        # elements per grid step to amortize the ~0.35 us per-step overhead.
        nb = max(1, target_block_bytes // max(img_bytes, 1))
        if N >= 2:
            # Keep at least 2 grid steps so both v7x TensorCores get work.
            nb = min(nb, max(1, N // 2))
        nb = min(nb, N)
        grid = (pl.cdiv(N, nb),)
        in_spec = pl.BlockSpec((nb, C, HW), lambda b: (b, 0, 0))
        out_spec = pl.BlockSpec((nb, C, HW), lambda b: (b, 0, 0))
        dim_sem = ("parallel",)
    else:
        # Large image: tile HW into lane blocks sized by bytes (~2 MiB/block),
        # multiple of 128 lanes. Last block may be partial (masked stores);
        # no wrapper padding or slicing needed.
        lanes_target = max(128, target_block_bytes // (C * itemsize))
        thw = min(_round_up(HW, 128), max(128, _round_down(lanes_target, 128)))
        grid = (N, pl.cdiv(HW, thw))
        in_spec = pl.BlockSpec((None, C, thw), lambda b, s: (b, 0, s))
        out_spec = pl.BlockSpec((None, C, thw), lambda b, s: (b, 0, s))
        dim_sem = ("parallel", "parallel")

    out = pl.pallas_call(
        kernel,
        out_shape=jax.ShapeDtypeStruct((N, C, HW), x.dtype),
        grid_spec=pltpu.PrefetchScalarGridSpec(
            num_scalar_prefetch=0,
            grid=grid,
            in_specs=[in_spec],
            out_specs=out_spec,
        ),
        compiler_params=pltpu.CompilerParams(dimension_semantics=dim_sem),
        cost_estimate=pl.CostEstimate(
            flops=3 * N * C * HW,            # square + accumulate + scale mul
            transcendentals=N * HW,          # one rsqrt per pixel
            bytes_accessed=2 * N * C * HW * itemsize,
        ),
    )(x2d)

    return out.reshape(N, C, H, W)


def _reference_pixel_norm(x):
    return x / jnp.sqrt(jnp.mean(x ** 2, axis=1, keepdims=True) + 1e-8)


if __name__ == "__main__":
    key = jax.random.PRNGKey(0)
    # Small NCHW input consistent with the module's forward.
    x = jax.random.normal(key, (2, 4, 16, 16), dtype=jnp.float32)

    out = pixel_norm(x)
    out = jax.block_until_ready(out)

    ref = _reference_pixel_norm(x)
    assert out.shape == x.shape
    assert out.dtype == x.dtype
    assert jnp.allclose(out, ref, atol=1e-5, rtol=1e-5), "mismatch vs reference"

    print("KERNEL_OK")
</pallas_src>

<mosaic_0001>
module attributes {stable_mosaic.version = 11 : i64} {
  func.func @_pixelnorm_kernel(%arg0: i32, %arg1: memref<1x4x256xf32, #tpu.memory_space<vmem>>, %arg2: memref<1x4x256xf32, #tpu.memory_space<vmem>>) attributes {dimension_semantics = [#tpu.dimension_semantics<parallel>], iteration_bounds = array<i64: 2>, scalar_prefetch = 0 : i64, scratch_operands = 0 : i64, tpu.core_type = #tpu.core_type<tc>, window_params = [{transform_indices = @transform_0, window_bounds = array<i64: 1, 4, 256>}, {transform_indices = @transform_1, window_bounds = array<i64: 1, 4, 256>}]} {
    %c0 = arith.constant 0 : index
    %c0_0 = arith.constant 0 : index
    %c0_1 = arith.constant 0 : index
    %0 = vector.load %arg1[%c0, %c0_0, %c0_1] : memref<1x4x256xf32, #tpu.memory_space<vmem>>, vector<1x4x256xf32>
    %1 = arith.mulf %0, %0 : vector<1x4x256xf32>
    %cst = arith.constant dense<0.000000e+00> : vector<1x256xf32>
    %2 = vector.multi_reduction <add>, %1, %cst [1] : vector<1x4x256xf32> to vector<1x256xf32>
    %3 = vector.shape_cast %2 : vector<1x256xf32> to vector<1x1x256xf32>
    %cst_2 = arith.constant 2.500000e-01 : f32
    %4 = vector.broadcast %cst_2 : f32 to vector<1x1x256xf32>
    %5 = arith.mulf %3, %4 : vector<1x1x256xf32>
    %cst_3 = arith.constant 9.99999993E-9 : f32
    %6 = vector.broadcast %cst_3 : f32 to vector<1x1x256xf32>
    %7 = arith.addf %5, %6 : vector<1x1x256xf32>
    %8 = math.rsqrt %7 : vector<1x1x256xf32>
    %9 = vector.broadcast %8 : vector<1x1x256xf32> to vector<1x4x256xf32>
    %10 = arith.mulf %0, %9 : vector<1x4x256xf32>
    %c0_4 = arith.constant 0 : index
    %c0_5 = arith.constant 0 : index
    %c0_6 = arith.constant 0 : index
    %11 = vector.load %arg2[%c0_4, %c0_5, %c0_6] : memref<1x4x256xf32, #tpu.memory_space<vmem>>, vector<1x4x256xf32>
    tpu.vector_store %arg2[%c0_4, %c0_5, %c0_6], %10 {strides = array<i32>} : memref<1x4x256xf32, #tpu.memory_space<vmem>>, vector<1x4x256xf32>,
    return
  }
  func.func @transform_0(%arg0: i32) -> (i32, i32, i32) {
    %c0_i32 = arith.constant 0 : i32
    %c0_i32_0 = arith.constant 0 : i32
    %c0_i32_1 = arith.constant 0 : i32
    return %arg0, %c0_i32, %c0_i32_0 : i32, i32, i32
  }
  func.func @transform_1(%arg0: i32) -> (i32, i32, i32) {
    %c0_i32 = arith.constant 0 : i32
    %c0_i32_0 = arith.constant 0 : i32
    %c0_i32_1 = arith.constant 0 : i32
    return %arg0, %c0_i32, %c0_i32_0 : i32, i32, i32
  }
}

</mosaic_0001>

<bundles_post_ra>
// kernel: tpu_custom_call.1
= control target key start
LH: loop header
LB: loop body
LE: loop exit
PB: predicated region body
PF: predicated region fallthrough
CT: control target
= control target key end

     0   :  { %6 = vsyncpa [#allocation3], 0  ;;  %s591_s0 = inlined_call_operand.hbm [shape: f32[2,4,256], index: 0, kind: input, shape index: {}]   ;;  %s592_s1 = inlined_call_operand.hbm [shape: f32[2,4,256], index: 1, kind: output, shape index: {}]  }
   0x1   :  { %8 = vsyncpa [#allocation3 + $0x1], 0 }
   0x2   :  { %9 = vsyncpa [#allocation4], 0 }
   0x3   :  { %11 = vsyncpa [#allocation4 + $0x1], 0  ;;  %s426_s6 = smov 0   ;;  %s428_s7 = smov 0  }
   0x4   :  { %s430_s8 = smov 0   ;;  %s432_s9 = smov 0  }
   0x5 LB: > { %s447_s10 = sadd.s32 4294967295, %s412_s9   ;;  %s250_s11 = sadd.s32 4294967294, %s412_s9   ;;  %s412_s9 = sphi %s432_s9, %s607_s9   ;;  %s408_s8 = sphi %s430_s8, %s606_s8   ;;  %s404_s7 = sphi %s428_s7, %s605_s7   ;;  %s400_s6 = sphi %s426_s6, %s604_s6  }
   0x6   : > { %s451_s12 = sadd.s32 1, %s412_s9   ;;  %s24_s13 = sadd.s32 1, %s408_s8 }
   0x7   : > { %s21_s14 = ssub.s32 %s412_s9, %s451_s12  ;;  %p31_p0 = scmp.ne.s32.totalorder %s408_s8, %s404_s7 }
   0x8   : > { %p22_p1 = scmp.eq.s32.totalorder %s21_s14, 0  ;;  %p32_p2 = scmp.eq.s32.totalorder %s412_s9, 0 }
   0x9   : > { %p37_p3 = scmp.ne.s32.totalorder %s404_s7, %s400_s6  ;;  %p38_p4 = scmp.eq.s32.totalorder %s447_s10, 0 }
   0xa   : > { %s463_s15 = scalar_select %p22_p1, %s408_s8, %s24_s13  }
   0xb   : > { %p465_p5 = por %p32_p2, %p31_p0  ;;  %p469_p6 = por %p38_p4, %p37_p3 }
   0xc   : > { %p61_p7 = scmp.eq.s32.totalorder %s447_s10, 1  ;;  %p67_p8 = scmp.eq.s32.totalorder %s250_s11, 1 }
   0xd   : > { %p278_p10 = scmp.lt.s32.totalorder %s412_s9, 2  ;;  %s87_s20 = sand.u32 1, %s408_s8  }
   0xe   : > { %p476_p11 = por %p61_p7, %p31_p0  ;;  %p480_p12 = por %p67_p8, %p37_p3 }
   0xf   : > { %s264_s21 = sshll.u32 %s412_s9, 7  ;;  %s253_s22 = sshll.u32 %s87_s20, 3 }
  0x10   : > { %s596_s18 = scalar_select %p476_p11, 1, 0 }
  0x11   : > { %s597_s19 = scalar_select %p480_p12, 1, 0 }
  0x12   : > { %s489_s25 = scalar_lea.hbm %s591_s0, %s264_s21  ;;  %s91_s26 = scalar_lea.vmem [#allocation2], %s253_s22 }
  0x13   : > { %s99_s27 = sshll.u32 %s91_s26, 4  ;;  %p493_p13 = pnand %p278_p10, %p465_p5  ;;  %s497_s27 = int_to_ptr.vmem [resolvable:$true] %s99_s27 }
  0x14   : > { %s88_s29 = scalar_lea.sflag [#allocation3], %s87_s20  ;;  %s316_s30 = scalar_lea.hbm %s489_s25, 128 }
  0x15   : > { %p317_p2 = scmp.ne.s32.totalorder %s489_s25, %s316_s30  ;;  %p318_p3 = pneg %p493_p13 }
  0x16   : > { %s321_s4 = scalar_lea.hbm %s591_s0, 256  ;;  %p322_p5 = scmp.lt.u32.totalorder %s489_s25, %s591_s0 }
  0x17   : > { %p319_p4 = pnand %p318_p3, %p317_p2  ;;  %p323_p8 = scmp.lt.u32.totalorder %s321_s4, %s316_s30 }
  0x18   : > { %p325_p9 = scmp.lt.u32.totalorder %s316_s30, %s489_s25 }
  0x19   : > { %p320_p7 = pneg %p319_p4  ;;  %p324_p10 = por %p323_p8, %p322_p5 }
  0x1b   : > { %p326_p0 = por %p325_p9, %p324_p10 }
  0x1d   : > { %p327_p1 = pnand %p326_p0, %p320_p7 }
  0x1f   : > { %330 = shalt.err (!%p327_p1)
}
  0x20   : > { %s331_s13 = scalar_lea.vmem %s497_s27, 128  ;;  %s414_s14 = smov [#allocation2]  }
  0x21   : > { %p332_p2 = scmp.ne.s32.totalorder %s497_s27, %s331_s13  ;;  %s336_s16 = sshll.u32 %s414_s14, 4  ;;  %s337_s16 = int_to_ptr.vmem [resolvable:$false] %s336_s16 }
  0x22   : > { %s338_s20 = scalar_lea.vmem %s337_s16, 256  ;;  %p339_p11 = scmp.lt.s32.totalorder %s497_s27, %s337_s16 }
  0x23   : > { %p334_p4 = pnand %p332_p2, %p318_p3  ;;  %p340_p5 = scmp.lt.s32.totalorder %s338_s20, %s331_s13 }
  0x25   : > { %p335_p12 = pneg %p334_p4  ;;  %p341_p8 = por %p340_p5, %p339_p11 }
  0x27   : > { %p342_p9 = pnand %p341_p8, %p335_p12 }
  0x29   : > { %345 = shalt.err (!%p342_p9)
}
  0x2a   : > { %273 = dma.hbm_to_vmem [thread:$0]  (!%p493_p13), %s489_s25, 128, %s497_s27, %s88_s29  }
  0x2b   : > { %p599_p0 = scmp.lt.s32.totalorder %s412_s9, 3  ;;  %p600_p1 = scmp.ge.s32.totalorder %s412_s9, 1 }
  0x2d   : > { %p105_p3 = pnand %p600_p1, %p599_p0 }
  0x2e   : > { %s531_s21 = sand.u32 (!%p105_p3), 1, %s404_s7  }
  0x2f   : > { %108 = sbr.rel (%p105_p3) target bundleno = 106 (0x6a), region = 24  ;;  %s257_s22 = sshll.u32 (!%p105_p3), %s531_s21, 3 }
  0x30   : > { %s111_s23 = scalar_lea.sflag (!%p105_p3), [#allocation3], %s531_s21  ;;  %s114_s24 = scalar_lea.vmem (!%p105_p3), [#allocation2], %s257_s22 }
  0x36   : > { %391 = dma.done.wait (%p469_p6), %s111_s23, 128  }
  0x37   : > { %393 = vsyncadd (%p469_p6), %s111_s23, 4294967168  ;;  %v133_v0 = vld [vmem:[%s114_s24] sm:$0xff]  ;;  %vm138_vm0 = vcmask 1043456   ;;  %s132_s17 = scalar_lea.vmem [#allocation5], %s257_s22  ;;  %s265_s26 = sshll.u32 %s447_s10, 7 }
  0x38   : > { %v134_v1 = vmul.f32 %v133_v0, %v133_v0  ;;  %s180_s25 = sshll.u32 %s132_s17, 4  ;;  %s549_s29 = scalar_lea.hbm %s592_s1, %s265_s26  ;;  %s544_s25 = int_to_ptr.vmem [resolvable:$true] %s180_s25 }
  0x39   : > { %s166_s30 = scalar_lea.sflag [#allocation4], %s531_s21  ;;  %s346_s2 = scalar_lea.vmem %s544_s25, 128 }
  0x3a   : > { %v136_v2 = vcombine.high %v134_v1, %v134_v1  ;;  %v139_v3 = vsel %vm138_vm0, %v134_v1, 0.0  ;;  %p347_p6 = scmp.ne.s32.totalorder %s544_s25, %s346_s2  ;;  %p601_p11 = scmp.ne.s32.totalorder %s596_s18, 0 }
  0x3b   : > { %v140_v4 = vrot.slane %v139_v3, 4  ;;  %s415_s10 = smov [#allocation5]  }
  0x3c   : > { %v146_v5 = vsel %vm138_vm0, %v136_v2, 0.0  ;;  %p348_p12 = pnand %p347_p6, %p601_p11  ;;  %s350_s3 = sshll.u32 %s415_s10, 4  ;;  %s351_s3 = int_to_ptr.vmem [resolvable:$false] %s350_s3 }
  0x3d   : > { %v141_v6 = vadd.f32 %v140_v4, %v139_v3  ;;  %v147_v7 = vrot.slane %v146_v5, 4  ;;  %s352_s4 = scalar_lea.vmem %s351_s3, 256  ;;  %p353_p7 = scmp.lt.s32.totalorder %s544_s25, %s351_s3 }
  0x3e   : > { %p349_p13 = pneg %p348_p12  ;;  %p354_p10 = scmp.lt.s32.totalorder %s352_s4, %s346_s2 }
  0x3f   : > { %v142_v8 = vrot.slane %v141_v6, 2  ;;  %v148_v9 = vadd.f32 %v147_v7, %v146_v5 }
  0x40   : > { %p355_p2 = por %p354_p10, %p353_p7 }
  0x41   : > { %v143_v10 = vadd.f32 %v142_v8, %v141_v6  ;;  %v149_v11 = vrot.slane %v148_v9, 2 }
  0x42   : > { %p356_p4 = pnand %p355_p2, %p349_p13 }
  0x43   : > { %v144_v12 = vrot.slane %v143_v10, 1  ;;  %v150_v13 = vadd.f32 %v149_v11, %v148_v9 }
  0x45   : > { %v145_v14 = vadd.f32 %v144_v12, %v143_v10  ;;  %v151_v15 = vrot.slane %v150_v13, 1 }
  0x47   : > { %v152_v16 = vadd.f32 %v151_v15, %v150_v13  ;;  %v153_v17 = vmul.f32 0.25, %v145_v14 }
  0x49   : > { %v154_v18 = vmul.f32 0.25, %v152_v16  ;;  %v155_v19 = vadd.f32 1e-08, %v153_v17 }
  0x4b   : > { %v156_v20 = vadd.f32 1e-08, %v154_v18  ;;  %312 = vrsqrt.f32 %v155_v19 }
  0x4d   : > { %314 = vrsqrt.f32 %v156_v20 }
  0x55   : > { %v313_v21 = vpop.eup %312 }
  0x57   : > { %v315_v22 = vpop.eup %314 }
  0x58   : > { %v161_v23 = vcombine.low %v313_v21, %v315_v22 }
  0x5a   : > { %v163_v24 = vmul.f32 %v161_v23, %v133_v0 }
  0x5c   : > { %164 = vst [vmem:[%s132_s17] sm:$0xff] %v163_v24 }
  0x5d   : > { %359 = shalt.err (!%p356_p4)
}
  0x5e   : > { %s360_s5 = scalar_lea.hbm %s549_s29, 128  ;;  %s364_s14 = scalar_lea.hbm %s592_s1, 256 }
  0x5f   : > { %p361_p5 = scmp.ne.s32.totalorder %s549_s29, %s360_s5  ;;  %p365_p0 = scmp.lt.u32.totalorder %s549_s29, %s592_s1 }
  0x60   : > { %p366_p1 = scmp.lt.u32.totalorder %s364_s14, %s360_s5  ;;  %p368_p6 = scmp.lt.u32.totalorder %s360_s5, %s549_s29 }
  0x61   : > { %p362_p8 = pnand %p361_p5, %p601_p11 }
  0x62   : > { %p367_p3 = por %p366_p1, %p365_p0 }
  0x63   : > { %p363_p9 = pneg %p362_p8 }
  0x64   : > { %p369_p12 = por %p368_p6, %p367_p3 }
  0x66   : > { %p370_p13 = pnand %p369_p12, %p363_p9 }
  0x68   : > { %373 = shalt.err (!%p370_p13)
}
  0x69   : > { %268 = dma.vmem_to_hbm [thread:$0]  (%p601_p11), %s544_s25, 128, %s549_s29, %s166_s30  }
  0x6a PF: > { %s192_s21 = sand.u32 1, %s400_s6   ;;  %p602_p7 = scmp.ne.s32.totalorder %s597_s19, 0 }
  0x6b   : > { %p603_p10 = scmp.ge.s32.totalorder %s412_s9, 2  ;;  %s193_s22 = scalar_lea.sflag [#allocation4], %s192_s21 }
  0x6d   : > { %p275_p2 = pnand %p603_p10, %p602_p7 }
  0x6f   : > { %395 = dma.done.wait (!%p275_p2), %s193_s22, 128  }
  0x70   : > { %397 = vsyncadd (!%p275_p2), %s193_s22, 4294967168  ;;  %p14_p4 = scmp.ge.s32.totalorder %s451_s12, 4   ;;  %s604_s6 = smov %s404_s7 }
  0x71   : > { %s605_s7 = smov %s408_s8  ;;  %s606_s8 = smov %s463_s15 }
  0x72   : > { %s607_s9 = smov %s451_s12  ;;  %16 = sbr.rel (!%p14_p4) target bundleno = 5 (0x5), region = 69 }
  0x79   :  { %198 = vsyncpa [#allocation3], 1 }
  0x7a   :  { %200 = vsyncpa [#allocation3 + $0x1], 1 }
  0x7b   :  { %201 = vsyncpa [#allocation4], 1 }
  0x7c   :  { %203 = vsyncpa [#allocation4 + $0x1], 1 }

</bundles_post_ra>
